<compile_context>
chip_gen: v5e
topology: v5e:2x2
jax: 0.10.0
libtpu: 0.0.40
codegen_flags: <defaults>
</compile_context>

<pallas_src>
import functools

import jax
import jax.numpy as jnp
from jax import lax
from jax.experimental import pallas as pl
from jax.experimental.pallas import tpu as pltpu


def _round_up(x, m):
    return ((x + m - 1) // m) * m


def _tubelet_proj_kernel(a_ref, w_ref, b_ref, o_ref):
    # a_ref: (tm, K)      bf16 patch rows (double-buffered, streamed over M)
    # w_ref: (K, E_pad)   bf16 weight      (resident: constant index_map)
    # b_ref: (1, E_pad)   f32 bias         (resident)
    # o_ref: (tm, E_pad)  output tile      (lane-dense: E_pad % 128 == 0)
    acc = jnp.dot(a_ref[...], w_ref[...], preferred_element_type=jnp.float32)
    o_ref[...] = (acc + b_ref[...]).astype(o_ref.dtype)


@functools.partial(
    jax.jit,
    static_argnames=("early_stride", "patch_size", "compute_dtype", "block_m"))
def tubelet_embed(x, weight, bias, *, early_stride, patch_size,
                  compute_dtype=jnp.bfloat16, block_m=512):
    """Forward pass of TubeletEmbed.

    x:      (B, C, T, H, W)  with T == early_stride
    weight: (E, C, early_stride, patch_size, patch_size)  (PyTorch Conv3d layout)
    bias:   (E,)
    returns (B, num_patches, E)
    """
    B, C, T, H, W = x.shape
    E = weight.shape[0]
    es, ph, pw = early_stride, patch_size, patch_size
    assert T == es and H % ph == 0 and W % pw == 0
    nh, nw = H // ph, W // pw
    num_patches = nh * nw
    M = B * num_patches
    K = C * es * ph * pw
    out_dtype = x.dtype

    # ---- patch extraction (im2col), plain JAX --------------------------
    # Per-row flatten order (c, t, kh, kw) matches torch weight.reshape(E,-1).
    # allow_input_fusion below permits XLA to fuse this transpose/reshape/cast
    # into the pallas_call's first operand instead of a standalone HBM copy.
    xp = x.reshape(B, C, T, nh, ph, nw, pw)
    xp = jnp.transpose(xp, (0, 3, 5, 1, 2, 4, 6))
    patches = xp.reshape(M, K).astype(compute_dtype)             # (M, K)

    # ---- M tiling (multiple of 16 rows for bf16 sublane packing) -------
    tm = min(block_m, _round_up(M, 16))
    grid_m = pl.cdiv(M, tm)
    M_pad = grid_m * tm
    if M_pad != M:
        patches = jnp.pad(patches, ((0, M_pad - M), (0, 0)))     # zero tail rows

    # ---- lane-dense output: pad E up to a multiple of 128 ---------------
    E_pad = _round_up(E, 128)
    wmat = weight.reshape(E, K).T.astype(compute_dtype)          # (K, E)
    if E_pad != E:
        wmat = jnp.pad(wmat, ((0, 0), (0, E_pad - E)))
    bmat = jnp.pad(bias.astype(jnp.float32).reshape(1, E),
                   ((0, 0), (0, E_pad - E)))                     # (1, E_pad) f32

    # ---- VMEM budget: weight + 2x patch tile + 2x out tile + bias -------
    cbytes = jnp.dtype(compute_dtype).itemsize
    obytes = jnp.dtype(out_dtype).itemsize
    vmem_need = (2 * tm * K * cbytes          # double-buffered patch tiles
                 + 2 * K * E_pad * cbytes     # weight (counted x2, conservative)
                 + 2 * tm * E_pad * obytes    # double-buffered output tiles
                 + 2 * E_pad * 4)             # bias
    vmem_limit = max(int(vmem_need * 1.25) + (2 << 20), 16 << 20)

    # NOTE: if K ever needs tiling (much larger C/es/ps on v7x's 64 MiB VMEM),
    # add an inner "arbitrary" K grid axis with a VMEM f32 accumulator and
    # pl.when init/finalize. If profiling shows exposed DMA at small tm,
    # pipeline_mode=pl.Buffered(3) on the patches input is the next lever.
    out = pl.pallas_call(
        _tubelet_proj_kernel,
        out_shape=jax.ShapeDtypeStruct((M_pad, E_pad), out_dtype),
        grid_spec=pltpu.PrefetchScalarGridSpec(
            num_scalar_prefetch=0,
            grid=(grid_m,),
            in_specs=[
                pl.BlockSpec((tm, K), lambda i: (i, 0)),        # streamed over M
                pl.BlockSpec((K, E_pad), lambda i: (0, 0)),     # weight resident
                pl.BlockSpec((1, E_pad), lambda i: (0, 0)),     # bias resident
            ],
            out_specs=pl.BlockSpec((tm, E_pad), lambda i: (i, 0)),
        ),
        compiler_params=pltpu.CompilerParams(
            dimension_semantics=("parallel",),          # megacore shard over M tiles
            allow_input_fusion=[True, False, False],    # fuse im2col into operand 0
            vmem_limit_bytes=vmem_limit,
        ),
    )(patches, wmat, bmat)

    out = out[:M, :E]                                    # drop M / E padding
    return out.reshape(B, num_patches, E)


def _reference_conv3d(x, weight, bias, es, ps):
    """Plain-JAX reference: Conv3d(k=stride=(es,ps,ps)) then flatten(2).transpose(1,2)."""
    y = lax.conv_general_dilated(
        x, weight,
        window_strides=(es, ps, ps),
        padding="VALID",
        dimension_numbers=("NCDHW", "OIDHW", "NCDHW"),
    )
    y = y + bias.reshape(1, -1, 1, 1, 1)
    B, E = y.shape[0], y.shape[1]
    return jnp.transpose(y.reshape(B, E, -1), (0, 2, 1))


if __name__ == "__main__":
    # Small shapes consistent with the module:
    #   img_size=16, patch_size=8, early_stride=4, in_chans=3, embed_dim=32
    B, C = 2, 3
    img_size, patch_size, early_stride, embed_dim = 16, 8, 4, 32

    key = jax.random.PRNGKey(0)
    kx, kw, kb = jax.random.split(key, 3)

    x = jax.random.normal(kx, (B, C, early_stride, img_size, img_size), jnp.float32)
    weight = 0.02 * jax.random.normal(
        kw, (embed_dim, C, early_stride, patch_size, patch_size), jnp.float32)
    bias = 0.01 * jax.random.normal(kb, (embed_dim,), jnp.float32)

    out = tubelet_embed(x, weight, bias,
                        early_stride=early_stride, patch_size=patch_size)
    out = jax.block_until_ready(out)

    ref = _reference_conv3d(x, weight, bias, early_stride, patch_size)
    num_patches = (img_size // patch_size) ** 2
    assert out.shape == (B, num_patches, embed_dim), out.shape
    # bf16 MXU operands (f32 accumulation) -> relaxed tolerance vs f32 conv ref.
    assert jnp.allclose(out, ref, atol=2e-2, rtol=2e-2), "mismatch vs conv reference"

    print("KERNEL_OK")
</pallas_src>

<mosaic_0001>
module attributes {stable_mosaic.version = 11 : i64} {
  func.func @_tubelet_proj_kernel(%arg0: i32, %arg1: memref<16x768xbf16, #tpu.memory_space<vmem>>, %arg2: memref<768x128xbf16, #tpu.memory_space<vmem>>, %arg3: memref<1x128xf32, #tpu.memory_space<vmem>>, %arg4: memref<16x128xf32, #tpu.memory_space<vmem>>) attributes {dimension_semantics = [#tpu.dimension_semantics<parallel>], iteration_bounds = array<i64: 1>, scalar_prefetch = 0 : i64, scratch_operands = 0 : i64, tpu.core_type = #tpu.core_type<tc>, window_params = [{transform_indices = @transform_0, window_bounds = array<i64: 16, 768>}, {pipeline_mode = #tpu.pipeline_mode<synchronous>, transform_indices = @transform_1, window_bounds = array<i64: 768, 128>}, {pipeline_mode = #tpu.pipeline_mode<synchronous>, transform_indices = @transform_2, window_bounds = array<i64: 1, 128>}, {transform_indices = @transform_3, window_bounds = array<i64: 16, 128>}]} {
    %c0 = arith.constant 0 : index
    %c0_0 = arith.constant 0 : index
    %0 = vector.load %arg1[%c0, %c0_0] : memref<16x768xbf16, #tpu.memory_space<vmem>>, vector<16x768xbf16>
    %c0_1 = arith.constant 0 : index
    %c0_2 = arith.constant 0 : index
    %1 = vector.load %arg2[%c0_1, %c0_2] : memref<768x128xbf16, #tpu.memory_space<vmem>>, vector<768x128xbf16>
    %cst = arith.constant dense<0.000000e+00> : vector<16x128xf32>
    %2 = tpu.matmul %0, %1, %cst {dimension_numbers = #tpu.dot_dimension_numbers<[1], [0], [0], [1], [0, 0, 1, 1], [], []>} : vector<16x768xbf16>, vector<768x128xbf16>, vector<16x128xf32> -> vector<16x128xf32>
    %c0_3 = arith.constant 0 : index
    %c0_4 = arith.constant 0 : index
    %3 = vector.load %arg3[%c0_3, %c0_4] : memref<1x128xf32, #tpu.memory_space<vmem>>, vector<1x128xf32>
    %4 = vector.broadcast %3 : vector<1x128xf32> to vector<16x128xf32>
    %5 = arith.addf %2, %4 : vector<16x128xf32>
    %c0_5 = arith.constant 0 : index
    %c0_6 = arith.constant 0 : index
    %6 = vector.load %arg4[%c0_5, %c0_6] : memref<16x128xf32, #tpu.memory_space<vmem>>, vector<16x128xf32>
    tpu.vector_store %arg4[%c0_5, %c0_6], %5 {strides = array<i32>} : memref<16x128xf32, #tpu.memory_space<vmem>>, vector<16x128xf32>,
    return
  }
  func.func @transform_0(%arg0: i32) -> (i32, i32) {
    %c0_i32 = arith.constant 0 : i32
    %c0_i32_0 = arith.constant 0 : i32
    return %arg0, %c0_i32 : i32, i32
  }
  func.func @transform_1(%arg0: i32) -> (i32, i32) {
    %c0_i32 = arith.constant 0 : i32
    %c0_i32_0 = arith.constant 0 : i32
    %c0_i32_1 = arith.constant 0 : i32
    return %c0_i32, %c0_i32_0 : i32, i32
  }
  func.func @transform_2(%arg0: i32) -> (i32, i32) {
    %c0_i32 = arith.constant 0 : i32
    %c0_i32_0 = arith.constant 0 : i32
    %c0_i32_1 = arith.constant 0 : i32
    return %c0_i32, %c0_i32_0 : i32, i32
  }
  func.func @transform_3(%arg0: i32) -> (i32, i32) {
    %c0_i32 = arith.constant 0 : i32
    %c0_i32_0 = arith.constant 0 : i32
    return %arg0, %c0_i32 : i32, i32
  }
}

</mosaic_0001>

<bundles_post_ra>
// kernel: tubelet_embed.2
= control target key start
LH: loop header
LB: loop body
LE: loop exit
PB: predicated region body
PF: predicated region fallthrough
CT: control target
= control target key end

     0   :  { %s1171_s0 = inlined_call_operand.vmem [shape: bf16[768,128], index: 0, kind: input, shape index: {}]   ;;  %s1172_s1 = inlined_call_operand.vmem [shape: f32[1,128], index: 1, kind: input, shape index: {}]   ;;  %s1173_s2 = inlined_call_operand.vmem [shape: bf16[8,768], index: 2, kind: input, shape index: {}]   ;;  %s1174_s3 = inlined_call_operand.<no memory space> [shape: bf16[], index: 3, kind: input, shape index: {}]   ;;  %s1175_s4 = inlined_call_operand.vmem [shape: f32[16,128], index: 4, kind: output, shape index: {}]  }
   0x1   :  { %v9_v0 = vstv %s1174_s3 }
   0x2   :  { %v10_v1 = vunpack.i.l.bf16 %v9_v0 }
   0x3   :  { %v904_v2 = vld [vmem:[%s1171_s0 + $0x38] sm:$0xff]  ;;  %v903_v7 = vld [vmem:[%s1171_s0 + $0x30] sm:$0xff]  ;;  %v902_v11 = vld [vmem:[%s1171_s0 + $0x28] sm:$0xff] }
   0x4   :  { %v912_v3 = vld [vmem:[%s1171_s0 + $0x78] sm:$0xff]  ;;  %v958_v5 = vpack.c.bf16 %v10_v1, %v10_v1  ;;  %580 = vmatpush.bf16.msra.mxu0 %v904_v2  ;;  %v911_v8 = vld [vmem:[%s1171_s0 + $0x70] sm:$0xff]  ;;  %v910_v12 = vld [vmem:[%s1171_s0 + $0x68] sm:$0xff] }
   0x5   :  { %v920_v4 = vld [vmem:[%s1171_s0 + $0xb8] sm:$0xff]  ;;  %594 = vmatpush.bf16.msra.mxu1 %v912_v3  ;;  %v919_v9 = vld [vmem:[%s1171_s0 + $0xb0] sm:$0xff]  ;;  %v918_v13 = vld [vmem:[%s1171_s0 + $0xa8] sm:$0xff] }
   0x6   :  { %v928_v6 = vld [vmem:[%s1171_s0 + $0xf8] sm:$0xff]  ;;  %964 = vst [vmem:[#allocation7 + $0x20] sm:$0xff] %v958_v5   ;;  %608 = vmatpush.bf16.msra.mxu2 %v920_v4  ;;  %v927_v10 = vld [vmem:[%s1171_s0 + $0xf0] sm:$0xff]  ;;  %v926_v14 = vld [vmem:[%s1171_s0 + $0xe8] sm:$0xff] }
   0x7   :  { %622 = vmatpush.bf16.msra.mxu3 %v928_v6  ;;  %959 = vst [vmem:[#allocation7 + $0x18] sm:$0xff] %v958_v5   ;;  %v901_v15 = vld [vmem:[%s1171_s0 + $0x20] sm:$0xff]  ;;  %v978_v19 = vld [vmem:[%s1173_s2 + $0x8] sm:$0xff]  ;;  %v900_v21 = vld [vmem:[%s1171_s0 + $0x18] sm:$0xff] }
   0x8   :  { %969 = vst [vmem:[#allocation7 + $0x28] sm:$0xff] %v958_v5   ;;  %581 = vmatpush.bf16.msra.mxu0 %v903_v7  ;;  %v909_v16 = vld [vmem:[%s1171_s0 + $0x60] sm:$0xff]  ;;  %v908_v22 = vld [vmem:[%s1171_s0 + $0x58] sm:$0xff]  ;;  %v899_v25 = vld [vmem:[%s1171_s0 + $0x10] sm:$0xff] }
   0x9   :  { %595 = vmatpush.bf16.msra.mxu1 %v911_v8  ;;  %v917_v17 = vld [vmem:[%s1171_s0 + $0xa0] sm:$0xff]  ;;  %949 = vst [vmem:[#allocation7 + $0x8] sm:$0xff] %v978_v19   ;;  %v916_v23 = vld [vmem:[%s1171_s0 + $0x98] sm:$0xff]  ;;  %v907_v26 = vld [vmem:[%s1171_s0 + $0x50] sm:$0xff] }
   0xa   :  { %609 = vmatpush.bf16.msra.mxu2 %v919_v9  ;;  %v925_v18 = vld [vmem:[%s1171_s0 + $0xe0] sm:$0xff]  ;;  %v924_v24 = vld [vmem:[%s1171_s0 + $0xd8] sm:$0xff]  ;;  %v979_v27 = vld [vmem:[%s1173_s2 + $0x10] sm:$0xff] }
   0xb   :  { %623 = vmatpush.bf16.msra.mxu3 %v927_v10  ;;  %v29_v20 = vld [vmem:[%s1173_s2] sm:$0xff]   ;;  %v915_v28 = vld [vmem:[%s1171_s0 + $0x90] sm:$0xff]  ;;  %954 = vst [vmem:[#allocation7 + $0x10] sm:$0xff] %v979_v27   ;;  %v898_v30 = vld [vmem:[%s1171_s0 + $0x8] sm:$0xff] }
   0xc   :  { %582 = vmatpush.bf16.msra.mxu0 %v902_v11  ;;  %35 = vst [vmem:[#allocation7] sm:$0xff] %v29_v20   ;;  %v923_v29 = vld [vmem:[%s1171_s0 + $0xd0] sm:$0xff]  ;;  %v906_v31 = vld [vmem:[%s1171_s0 + $0x48] sm:$0xff]  ;;  %v897_v34 = vld [vmem:[%s1171_s0] sm:$0xff] }
   0xd   :  { %596 = vmatpush.bf16.msra.mxu1 %v910_v12  ;;  %v914_v32 = vld [vmem:[%s1171_s0 + $0x88] sm:$0xff]  ;;  %v905_v35 = vld [vmem:[%s1171_s0 + $0x40] sm:$0xff]  ;;  %v936_v40 = vld [vmem:[%s1171_s0 + $0x138] sm:$0xff] }
   0xe   :  { %610 = vmatpush.bf16.msra.mxu2 %v918_v13  ;;  %v922_v33 = vld [vmem:[%s1171_s0 + $0xc8] sm:$0xff]  ;;  %v894_v36 = vld [vmem:[#allocation7 + $0x14] sm:$0xf0]  ;;  %v679_v39 = vld [vmem:[#allocation7 + $0x18] sm:$0xf0] }
   0xf   :  { %624 = vmatpush.bf16.msra.mxu3 %v926_v14  ;;  %v944_v41 = vld [vmem:[%s1171_s0 + $0x178] sm:$0xff]  ;;  %v913_v42 = vld [vmem:[%s1171_s0 + $0x80] sm:$0xff]  ;;  %v935_v50 = vld [vmem:[%s1171_s0 + $0x130] sm:$0xff] }
  0x10   :  { %583 = vmatpush.bf16.msra.mxu0 %v901_v15  ;;  %v921_v43 = vld [vmem:[%s1171_s0 + $0xc0] sm:$0xff]  ;;  %v685_v45 = vld [vmem:[#allocation7 + $0x8] sm:$0xf]  ;;  %v892_v47 = vld [vmem:[#allocation7 + $0xc] sm:$0xf] }
  0x11   :  { %597 = vmatpush.bf16.msra.mxu1 %v909_v16  ;;  %v895_v44 = vld [vmem:[#allocation7 + $0x1c] sm:$0xf0]  ;;  %v687_v48 = vld [vmem:[#allocation7 + $0x20] sm:$0xf0]  ;;  %v943_v51 = vld [vmem:[%s1171_s0 + $0x170] sm:$0xff] }
  0x12   :  { %611 = vmatpush.bf16.msra.mxu2 %v917_v17  ;;  %v686_v52 = vor.u32 %v895_v44, %v685_v45  ;;  %v690_v53 = vor.u32 %v892_v47, %v687_v48  ;;  %v934_v54 = vld [vmem:[%s1171_s0 + $0x128] sm:$0xff]  ;;  %v933_v56 = vld [vmem:[%s1171_s0 + $0x120] sm:$0xff]  ;;  %v932_v58 = vld [vmem:[%s1171_s0 + $0x118] sm:$0xff] }
  0x13   :  { %625 = vmatpush.bf16.msra.mxu3 %v925_v18  ;;  %v677_v37 = vld [vmem:[#allocation7] sm:$0xf]  ;;  %v891_v38 = vld [vmem:[#allocation7 + $0x4] sm:$0xf]  ;;  %v942_v55 = vld [vmem:[%s1171_s0 + $0x168] sm:$0xff] }
  0x14   :  { %584 = vmatpush.bf16.msra.mxu0 %v900_v21  ;;  %v678_v46 = vor.u32 %v894_v36, %v677_v37  ;;  %v682_v49 = vor.u32 %v891_v38, %v679_v39  ;;  %v941_v57 = vld [vmem:[%s1171_s0 + $0x160] sm:$0xff]  ;;  %v940_v59 = vld [vmem:[%s1171_s0 + $0x158] sm:$0xff]  ;;  %v931_v60 = vld [vmem:[%s1171_s0 + $0x110] sm:$0xff] }
  0x15   :  { %598 = vmatpush.bf16.msra.mxu1 %v908_v22  ;;  %v939_v61 = vld [vmem:[%s1171_s0 + $0x150] sm:$0xff]  ;;  %v930_v62 = vld [vmem:[%s1171_s0 + $0x108] sm:$0xff]  ;;  %v929_v0 = vld [vmem:[%s1171_s0 + $0x100] sm:$0xff] }
  0x16   :  { %612 = vmatpush.bf16.msra.mxu2 %v916_v23  ;;  %v938_v63 = vld [vmem:[%s1171_s0 + $0x148] sm:$0xff]  ;;  %v937_v1 = vld [vmem:[%s1171_s0 + $0x140] sm:$0xff]  ;;  %v693_v2 = vld [vmem:[#allocation7 + $0x10] sm:$0xf] }
  0x17   :  { %626 = vmatpush.bf16.msra.mxu3 %v924_v24  ;;  %v896_v3 = vld [vmem:[#allocation7 + $0x24] sm:$0xf0]  ;;  %v893_v4 = vld [vmem:[#allocation7 + $0x14] sm:$0xf]  ;;  %v695_v5 = vld [vmem:[#allocation7 + $0x28] sm:$0xf0] }
  0x18   :  { %585 = vmatpush.bf16.msra.mxu0 %v899_v25  ;;  %v694_v6 = vor.u32 %v896_v3, %v693_v2  ;;  %v698_v7 = vor.u32 %v893_v4, %v695_v5  ;;  %v980_v10 = vld [vmem:[%s1172_s1] ss:$0 sm:$0xff] }
  0x19   :  { %599 = vmatpush.bf16.msra.mxu1 %v907_v26 }
  0x1a   :  { %613 = vmatpush.bf16.msra.mxu2 %v915_v28 }
  0x1b   :  { %627 = vmatpush.bf16.msra.mxu3 %v923_v29 }
  0x1c   :  { %586 = vmatpush.bf16.msra.mxu0 %v898_v30 }
  0x1d   :  { %600 = vmatpush.bf16.msra.mxu1 %v906_v31 }
  0x1e   :  { %614 = vmatpush.bf16.msra.mxu2 %v914_v32 }
  0x1f   :  { %628 = vmatpush.bf16.msra.mxu3 %v922_v33 }
  0x20   :  { %587 = vmatpush.bf16.msra.mxu0 %v897_v34 }
  0x21   :  { %601 = vmatpush.bf16.msra.mxu1 %v905_v35 }
  0x22   :  { %615 = vmatpush.bf16.msra.mxu2 %v913_v42 }
  0x23   :  { %629 = vmatpush.bf16.msra.mxu3 %v921_v43  ;;  %588 = vmatmul.bf16.vlgmr.msra.gmra.mxu0 %v678_v46 }
  0x24   :  { %636 = vmatpush.bf16.msrb.mxu0 %v936_v40  ;;  %602 = vmatmul.bf16.vlgmr.msra.gmra.mxu1 %v682_v49 }
  0x25   :  { %650 = vmatpush.bf16.msrb.mxu1 %v944_v41  ;;  %616 = vmatmul.bf16.vlgmr.msra.gmra.mxu2 %v686_v52 }
  0x26   :  { %630 = vmatmul.bf16.vlgmr.msra.gmra.mxu3 %v690_v53 }
  0x28   :  { %637 = vmatpush.bf16.msrb.mxu0 %v935_v50 }
  0x29   :  { %651 = vmatpush.bf16.msrb.mxu1 %v943_v51 }
  0x2c   :  { %638 = vmatpush.bf16.msrb.mxu0 %v934_v54 }
  0x2d   :  { %652 = vmatpush.bf16.msrb.mxu1 %v942_v55 }
  0x30   :  { %639 = vmatpush.bf16.msrb.mxu0 %v933_v56 }
  0x31   :  { %653 = vmatpush.bf16.msrb.mxu1 %v941_v57 }
  0x34   :  { %640 = vmatpush.bf16.msrb.mxu0 %v932_v58 }
  0x35   :  { %654 = vmatpush.bf16.msrb.mxu1 %v940_v59 }
  0x38   :  { %641 = vmatpush.bf16.msrb.mxu0 %v931_v60 }
  0x39   :  { %655 = vmatpush.bf16.msrb.mxu1 %v939_v61 }
  0x3c   :  { %642 = vmatpush.bf16.msrb.mxu0 %v930_v62 }
  0x3d   :  { %656 = vmatpush.bf16.msrb.mxu1 %v938_v63 }
  0x40   :  { %643 = vmatpush.bf16.msrb.mxu0 %v929_v0 }
  0x41   :  { %657 = vmatpush.bf16.msrb.mxu1 %v937_v1 }
  0x43   :  { %644 = vmatmul.bf16.vlgmr.msrb.gmra.mxu0 %v694_v6 }
  0x44   :  { %658 = vmatmul.bf16.vlgmr.msrb.gmra.mxu1 %v698_v7 }
  0xa0   :  { %v589_v8 = vpop.f32.mrf.mxu0 }
  0xa1   :  { %v603_v9 = vpop.f32.mrf.mxu1  ;;  %v590_v11 = vadd.f32 %v980_v10, %v589_v8 }
  0xa3   :  { %v604_v13 = vadd.f32 %v603_v9, %v590_v11 }
  0xa8   :  { %v617_v12 = vpop.f32.mrf.mxu2  ;;  %v591_v14 = vpop.f32.mrf.mxu0 }
  0xa9   :  { %v605_v15 = vpop.f32.mrf.mxu1  ;;  %v631_v16 = vpop.f32.mrf.mxu3  ;;  %v618_v17 = vadd.f32 %v617_v12, %v604_v13  ;;  %v592_v18 = vadd.f32 %v980_v10, %v591_v14 }
  0xab   :  { %v632_v19 = vadd.f32 %v631_v16, %v618_v17  ;;  %v606_v20 = vadd.f32 %v605_v15, %v592_v18 }
  0xb0   :  { %v619_v21 = vpop.f32.mrf.mxu2 }
  0xb1   :  { %v620_v25 = vadd.f32 %v619_v21, %v606_v20  ;;  %v633_v27 = vpop.f32.mrf.mxu3 }
  0xb3   :  { %v634_v28 = vadd.f32 %v633_v27, %v620_v25 }
  0xc0   :  { %v645_v22 = vpop.f32.mrf.mxu0 }
  0xc1   :  { %v659_v23 = vpop.f32.mrf.mxu1  ;;  %v646_v24 = vadd.f32 %v645_v22, %v632_v19 }
  0xc3   :  { %v660_v26 = vadd.f32 %v659_v23, %v646_v24 }
  0xc5   :  { %664 = vst [vmem:[%s1175_s4] sm:$0xff] %v660_v26 }
  0xc8   :  { %v647_v29 = vpop.f32.mrf.mxu0 }
  0xc9   :  { %v648_v30 = vadd.f32 %v647_v29, %v634_v28  ;;  %v661_v31 = vpop.f32.mrf.mxu1 }
  0xcb   :  { %v662_v32 = vadd.f32 %v661_v31, %v648_v30 }
  0xcd   :  { %665 = vst [vmem:[%s1175_s4 + $0x8] sm:$0xff] %v662_v32 }

</bundles_post_ra>
